<compile_context>
chip_gen: v7x
topology: tpu7x:2x2x1
jax: 0.10.0
libtpu: 0.0.40
codegen_flags: <defaults>
</compile_context>

<pallas_src>
import jax
import jax.numpy as jnp
from jax.experimental import pallas as pl
from jax.experimental.pallas import tpu as pltpu


# ---------------------------------------------------------------------------
# Small helpers
# ---------------------------------------------------------------------------
def _round_up(x, m):
    return ((x + m - 1) // m) * m


def _physical_vmem_bytes():
    """Per-TensorCore VMEM capacity; conservative fallback if the query fails."""
    try:
        info = pltpu.get_tpu_info()
        vmem = getattr(info, "vmem_capacity_bytes", None)
        if vmem:
            return int(vmem)
    except Exception:  # pragma: no cover - defensive, never fatal
        pass
    return 64 << 20  # v7x per-core size == safe lower bound for v5e/v6e too


def _fc_vmem_budget():
    """Generation-specific fc VMEM budget: ~75% of physical, capped at 96 MiB.

    v5e/v6e (128 MiB physical) -> 96 MiB; v7x (64 MiB physical) -> 48 MiB.
    tn is derived FROM this budget; the limit is never clamped below the
    footprint of the chosen tiling.
    """
    return int(min(_physical_vmem_bytes() * 3 // 4, 96 << 20))


# ---------------------------------------------------------------------------
# Kernel 1a: embedding lookup, table resident in VMEM (small/medium tables).
# One grid step gathers G rows into a sublane-dense (G, E) output slab.
# nn.Embedding(padding_idx=...) semantics come for free: the pad row of the
# table is zero, so pad tokens gather the zero vector.
# ---------------------------------------------------------------------------
def _embed_resident_kernel(ids_ref, tbl_ref, out_ref):
    tg = out_ref.shape[0]
    base = pl.program_id(0) * tg
    for g in range(tg):                       # small static unroll (G <= 32)
        idx = ids_ref[base + g]               # scalar read from SMEM
        out_ref[pl.ds(g, 1), :] = tbl_ref[pl.ds(idx, 1), :]


# ---------------------------------------------------------------------------
# Kernel 1b: embedding lookup, table streamed from HBM (large tables).
# G row DMAs per grid step land directly in the (G, E) output block, so the
# writeback to HBM is one dense slab instead of G masked 512-B stores.
# ---------------------------------------------------------------------------
def _embed_dma_kernel(ids_ref, tbl_hbm, out_ref, sem):
    tg = out_ref.shape[0]
    base = pl.program_id(0) * tg
    for g in range(tg):                       # issue all row DMAs first
        idx = ids_ref[base + g]
        pltpu.make_async_copy(tbl_hbm.at[idx], out_ref.at[g], sem.at[g]).start()
    for g in range(tg):                       # then wait for all of them
        pltpu.make_async_copy(tbl_hbm.at[0], out_ref.at[g], sem.at[g]).wait()


def embedding_lookup(input_ids, table, *, tokens_per_step=32,
                     max_resident_bytes=4 << 20):
    """input_ids: int32 [B, S]; table: [V, E] -> [B, S, E] (table dtype)."""
    b, s = input_ids.shape
    v, e = table.shape
    n = b * s
    # Clamp ids so a bad token id can never drive an out-of-bounds row access.
    ids = jnp.clip(input_ids.reshape(n).astype(jnp.int32), 0, v - 1)

    # Tokens per grid step: multiple of 8 (sublane-dense output slab), <= 32.
    tg = max(8, min(_round_up(tokens_per_step, 8), _round_up(n, 8)))
    n_pad = _round_up(n, tg)
    if n_pad != n:
        ids = jnp.concatenate(
            [ids, jnp.zeros((n_pad - n,), jnp.int32)])  # pad with in-range ids
    grid = (n_pad // tg,)
    table_bytes = v * e * table.dtype.itemsize
    out_bytes = n_pad * e * table.dtype.itemsize
    cost = pl.CostEstimate(flops=0, transcendentals=0,
                           bytes_accessed=table_bytes + out_bytes + n_pad * 4)
    # "parallel": each step writes an independent output slab, no carried
    # state -> v7x can shard the token range across both TensorCores.
    cparams = pltpu.CompilerParams(dimension_semantics=("parallel",))

    if table_bytes <= max_resident_bytes:
        out = pl.pallas_call(
            _embed_resident_kernel,
            out_shape=jax.ShapeDtypeStruct((n_pad, e), table.dtype),
            grid_spec=pltpu.PrefetchScalarGridSpec(
                num_scalar_prefetch=1,
                grid=grid,
                in_specs=[
                    # Constant index_map -> the table is DMA'd once per core
                    # and stays resident across all grid steps.
                    pl.BlockSpec((v, e), lambda i, ids_ref: (0, 0)),
                ],
                out_specs=pl.BlockSpec((tg, e), lambda i, ids_ref: (i, 0)),
            ),
            compiler_params=cparams,
            cost_estimate=cost,
        )(ids, table)
    else:
        out = pl.pallas_call(
            _embed_dma_kernel,
            out_shape=jax.ShapeDtypeStruct((n_pad, e), table.dtype),
            grid_spec=pltpu.PrefetchScalarGridSpec(
                num_scalar_prefetch=1,
                grid=grid,
                in_specs=[pl.BlockSpec(memory_space=pl.ANY)],  # raw HBM table
                out_specs=pl.BlockSpec((tg, e), lambda i, ids_ref: (i, 0)),
                scratch_shapes=[pltpu.SemaphoreType.DMA((tg,))],
            ),
            compiler_params=cparams,
            cost_estimate=cost,
        )(ids, table)

    if n_pad != n:
        out = out[:n]
    return out.reshape(b, s, e)


# ---------------------------------------------------------------------------
# Kernel 2: fc head  logits = hidden @ W + bias  (W stored as bf16 [H, V]).
# Vocab-tiled grid streams W/bias/output tiles with BlockSpec double-buffering
# while the tiny hidden tile stays resident; bf16 x bf16 -> f32 on the MXU.
# ---------------------------------------------------------------------------
def _fc_kernel(h_ref, w_ref, b_ref, out_ref):
    out_ref[...] = (
        jnp.dot(h_ref[...], w_ref[...], preferred_element_type=jnp.float32)
        + b_ref[...]
    )


def _fc_vmem_requirement(b, h, tn, w_bytes, bias_bytes, hid_bytes):
    return (2 * h * tn * w_bytes        # double-buffered streamed W tiles
            + 2 * tn * bias_bytes       # double-buffered bias tiles
            + 2 * b * tn * 4            # double-buffered f32 output tiles
            + 2 * b * h * hid_bytes)    # hidden (constant index_map; tiny)


def _choose_tn(v, b, h, w_bytes, bias_bytes, hid_bytes, budget):
    """Largest lane-dense vocab tile that fits the per-generation VMEM budget
    while leaving >= 2 vocab tiles so the 'parallel' axis can feed both v7x
    TensorCores."""
    headroom = 2 << 20
    v_pad = _round_up(v, 128)
    for tn in (4096, 2048, 1024, 512, 256, 128):
        if tn > v_pad:
            continue
        if v_pad > 128 and pl.cdiv(v_pad, tn) < 2:
            continue  # keep at least 2 tiles for megacore sharding
        if _fc_vmem_requirement(b, h, tn, w_bytes, bias_bytes,
                                hid_bytes) + headroom <= budget:
            return tn
    return 128


def fc_head(hidden, w_hv, bias, *, tn=None):
    """hidden: bf16 [B, H]; w_hv: bf16 [H, V]; bias: f32 [1, V] -> f32 [B, V]."""
    b, h = hidden.shape
    h_w, v = w_hv.shape
    assert h_w == h
    budget = _fc_vmem_budget()
    if tn is None:
        tn = _choose_tn(v, b, h, w_hv.dtype.itemsize, bias.dtype.itemsize,
                        hidden.dtype.itemsize, budget)
    grid = (pl.cdiv(v, tn),)
    # TODO(synk): if B ever grows to >=128, add an M grid axis (tm=128 blocks)
    # instead of keeping the whole (B, H) hidden block resident.

    return pl.pallas_call(
        _fc_kernel,
        out_shape=jax.ShapeDtypeStruct((b, v), jnp.float32),
        grid_spec=pltpu.PrefetchScalarGridSpec(
            num_scalar_prefetch=0,
            grid=grid,
            in_specs=[
                pl.BlockSpec((b, h), lambda j: (0, 0)),    # hidden: resident
                pl.BlockSpec((h, tn), lambda j: (0, j)),   # W: streamed tiles
                pl.BlockSpec((1, tn), lambda j: (0, j)),   # bias tile
            ],
            out_specs=pl.BlockSpec((b, tn), lambda j: (0, j)),
        ),
        compiler_params=pltpu.CompilerParams(
            dimension_semantics=("parallel",),   # shards across v7x's 2 TCs
            vmem_limit_bytes=int(budget),        # tn derived from this budget
        ),
        cost_estimate=pl.CostEstimate(
            flops=2 * b * h * v,
            transcendentals=0,
            bytes_accessed=(h * v * w_hv.dtype.itemsize
                            + b * h * hidden.dtype.itemsize
                            + (b + 1) * v * 4),
        ),
    )(hidden, w_hv, bias)


# ---------------------------------------------------------------------------
# Parameter init (deterministic, mirrors PyTorch defaults).
# ---------------------------------------------------------------------------
def init_params(key, vocab_size, embed_dim, hidden_dim, pad_token_id):
    k_emb, k_w, k_b = jax.random.split(key, 3)
    # nn.Embedding default: N(0, 1), padding row zeroed.
    emb = jax.random.normal(k_emb, (vocab_size, embed_dim), jnp.float32)
    emb = emb.at[pad_token_id].set(0.0)
    # nn.Linear default: U(-1/sqrt(fan_in), 1/sqrt(fan_in)).
    bound = 1.0 / jnp.sqrt(hidden_dim)
    w_vh = jax.random.uniform(k_w, (vocab_size, hidden_dim), jnp.float32,
                              minval=-bound, maxval=bound)
    bias = jax.random.uniform(k_b, (vocab_size,), jnp.float32,
                              minval=-bound, maxval=bound)
    return {
        "embedding": emb,                                   # [V, E] f32
        # Intentional quantization: bf16 weights halve the HBM W stream; the
        # matmul still accumulates in f32 on the MXU (documented deviation
        # from PyTorch's fp32 nn.Linear).
        "fc_w": jnp.transpose(w_vh).astype(jnp.bfloat16),   # [H, V] bf16
        "fc_b": bias.reshape(1, -1),                        # [1, V] f32
    }


@jax.jit
def base_nn_forward(params, input_ids, hidden_state):
    """Concrete realization of BaseNN's compute: embed tokens, project hidden
    state to vocab logits. Returns (logits, embedded).
    """
    embedded = embedding_lookup(input_ids, params["embedding"])     # [B, S, E]
    # TODO(synk): BaseNN.forward is abstract and self.nn is None — the recurrent
    # core between embedding and fc is unspecified, so hidden_state feeds the
    # fc head directly.
    hidden_bf16 = hidden_state.astype(jnp.bfloat16)  # bf16 x bf16 -> f32 MXU
    logits = fc_head(hidden_bf16, params["fc_w"], params["fc_b"])   # [B, V]
    return logits, embedded


if __name__ == "__main__":
    VOCAB = 256
    EMBED = 128
    HIDDEN = 128
    PAD_ID = 0
    B, S = 2, 8

    key = jax.random.PRNGKey(0)
    k_params, k_ids, k_hidden = jax.random.split(key, 3)

    params = init_params(k_params, VOCAB, EMBED, HIDDEN, PAD_ID)
    input_ids = jax.random.randint(k_ids, (B, S), 0, VOCAB, dtype=jnp.int32)
    input_ids = input_ids.at[:, -1].set(PAD_ID)  # exercise the padding path
    hidden_state = jax.random.normal(k_hidden, (B, HIDDEN), jnp.float32)

    logits, embedded = base_nn_forward(params, input_ids, hidden_state)
    jax.block_until_ready((logits, embedded))

    # Also exercise the large-table (HBM-streaming DMA gather) path once.
    embedded_dma = embedding_lookup(input_ids, params["embedding"],
                                    max_resident_bytes=0)
    jax.block_until_ready(embedded_dma)

    # Lightweight correctness check against plain-JAX reference
    # (same bf16 weight quantization, f32 accumulation).
    ref_embedded = params["embedding"][input_ids]
    h_ref = hidden_state.astype(jnp.bfloat16).astype(jnp.float32)
    w_ref = params["fc_w"].astype(jnp.float32)
    ref_logits = h_ref @ w_ref + params["fc_b"]

    assert logits.shape == (B, VOCAB) and embedded.shape == (B, S, EMBED)
    assert jnp.allclose(embedded, ref_embedded, atol=1e-6)
    assert jnp.allclose(embedded_dma, ref_embedded, atol=1e-6)
    assert jnp.allclose(logits, ref_logits, atol=2e-3, rtol=2e-3)
    assert jnp.all(embedded[:, -1, :] == 0.0)  # pad tokens embed to zero

    print("KERNEL_OK")
</pallas_src>

<mosaic_0001>
module attributes {stable_mosaic.version = 11 : i64} {
  func.func @_fc_kernel(%arg0: i32, %arg1: memref<2x128xbf16, #tpu.memory_space<vmem>>, %arg2: memref<128x128xbf16, #tpu.memory_space<vmem>>, %arg3: memref<1x128xf32, #tpu.memory_space<vmem>>, %arg4: memref<2x128xf32, #tpu.memory_space<vmem>>) attributes {dimension_semantics = [#tpu.dimension_semantics<parallel>], iteration_bounds = array<i64: 2>, scalar_prefetch = 0 : i64, scratch_operands = 0 : i64, tpu.core_type = #tpu.core_type<tc>, window_params = [{pipeline_mode = #tpu.pipeline_mode<synchronous>, transform_indices = @transform_0, window_bounds = array<i64: 2, 128>}, {transform_indices = @transform_1, window_bounds = array<i64: 128, 128>}, {transform_indices = @transform_2, window_bounds = array<i64: 1, 128>}, {transform_indices = @transform_3, window_bounds = array<i64: 2, 128>}]} {
    %c0 = arith.constant 0 : index
    %c0_0 = arith.constant 0 : index
    %0 = vector.load %arg1[%c0, %c0_0] : memref<2x128xbf16, #tpu.memory_space<vmem>>, vector<2x128xbf16>
    %c0_1 = arith.constant 0 : index
    %c0_2 = arith.constant 0 : index
    %1 = vector.load %arg2[%c0_1, %c0_2] : memref<128x128xbf16, #tpu.memory_space<vmem>>, vector<128x128xbf16>
    %cst = arith.constant dense<0.000000e+00> : vector<2x128xf32>
    %2 = tpu.matmul %0, %1, %cst {dimension_numbers = #tpu.dot_dimension_numbers<[1], [0], [0], [1], [0, 0, 1, 1], [], []>} : vector<2x128xbf16>, vector<128x128xbf16>, vector<2x128xf32> -> vector<2x128xf32>
    %c0_3 = arith.constant 0 : index
    %c0_4 = arith.constant 0 : index
    %3 = vector.load %arg3[%c0_3, %c0_4] : memref<1x128xf32, #tpu.memory_space<vmem>>, vector<1x128xf32>
    %4 = vector.broadcast %3 : vector<1x128xf32> to vector<2x128xf32>
    %5 = arith.addf %2, %4 : vector<2x128xf32>
    %c0_5 = arith.constant 0 : index
    %c0_6 = arith.constant 0 : index
    %6 = vector.load %arg4[%c0_5, %c0_6] : memref<2x128xf32, #tpu.memory_space<vmem>>, vector<2x128xf32>
    tpu.vector_store %arg4[%c0_5, %c0_6], %5 {strides = array<i32>} : memref<2x128xf32, #tpu.memory_space<vmem>>, vector<2x128xf32>,
    return
  }
  func.func @transform_0(%arg0: i32) -> (i32, i32) {
    %c0_i32 = arith.constant 0 : i32
    %c0_i32_0 = arith.constant 0 : i32
    %c0_i32_1 = arith.constant 0 : i32
    return %c0_i32, %c0_i32_0 : i32, i32
  }
  func.func @transform_1(%arg0: i32) -> (i32, i32) {
    %c0_i32 = arith.constant 0 : i32
    %c0_i32_0 = arith.constant 0 : i32
    return %c0_i32, %arg0 : i32, i32
  }
  func.func @transform_2(%arg0: i32) -> (i32, i32) {
    %c0_i32 = arith.constant 0 : i32
    %c0_i32_0 = arith.constant 0 : i32
    return %c0_i32, %arg0 : i32, i32
  }
  func.func @transform_3(%arg0: i32) -> (i32, i32) {
    %c0_i32 = arith.constant 0 : i32
    %c0_i32_0 = arith.constant 0 : i32
    return %c0_i32, %arg0 : i32, i32
  }
}

module attributes {stable_mosaic.version = 11 : i64} {
  func.func @_embed_resident_kernel(%arg0: i32, %arg1: memref<16xi32, #tpu.memory_space<smem>>, %arg2: memref<256x128xf32, #tpu.memory_space<vmem>>, %arg3: memref<16x128xf32, #tpu.memory_space<vmem>>) attributes {dimension_semantics = [#tpu.dimension_semantics<parallel>], iteration_bounds = array<i64: 1>, scalar_prefetch = 1 : i64, scratch_operands = 0 : i64, tpu.core_type = #tpu.core_type<tc>, window_params = [{pipeline_mode = #tpu.pipeline_mode<synchronous>, transform_indices = @transform_0, window_bounds = array<i64: 256, 128>}, {transform_indices = @transform_1, window_bounds = array<i64: 16, 128>}]} {
    %c16_i32 = arith.constant 16 : i32
    %0 = arith.muli %arg0, %c16_i32 : i32
    %c0_i32 = arith.constant 0 : i32
    %1 = arith.addi %0, %c0_i32 : i32
    %2 = arith.index_cast %1 : i32 to index
    %3 = memref.load %arg1[%2] : memref<16xi32, #tpu.memory_space<smem>>
    %4 = arith.index_cast %3 : i32 to index
    %c0 = arith.constant 0 : index
    %5 = vector.load %arg2[%4, %c0] : memref<256x128xf32, #tpu.memory_space<vmem>>, vector<1x128xf32>
    %c0_0 = arith.constant 0 : index
    %c0_1 = arith.constant 0 : index
    %6 = vector.load %arg3[%c0_0, %c0_1] : memref<16x128xf32, #tpu.memory_space<vmem>>, vector<1x128xf32>
    tpu.vector_store %arg3[%c0_0, %c0_1], %5 {strides = array<i32>} : memref<16x128xf32, #tpu.memory_space<vmem>>, vector<1x128xf32>,
    %c1_i32 = arith.constant 1 : i32
    %7 = arith.addi %0, %c1_i32 : i32
    %8 = arith.index_cast %7 : i32 to index
    %9 = memref.load %arg1[%8] : memref<16xi32, #tpu.memory_space<smem>>
    %10 = arith.index_cast %9 : i32 to index
    %c0_2 = arith.constant 0 : index
    %11 = vector.load %arg2[%10, %c0_2] : memref<256x128xf32, #tpu.memory_space<vmem>>, vector<1x128xf32>
    %c1 = arith.constant 1 : index
    %c0_3 = arith.constant 0 : index
    %12 = vector.load %arg3[%c1, %c0_3] : memref<16x128xf32, #tpu.memory_space<vmem>>, vector<1x128xf32>
    tpu.vector_store %arg3[%c1, %c0_3], %11 {strides = array<i32>} : memref<16x128xf32, #tpu.memory_space<vmem>>, vector<1x128xf32>,
    %c2_i32 = arith.constant 2 : i32
    %13 = arith.addi %0, %c2_i32 : i32
    %14 = arith.index_cast %13 : i32 to index
    %15 = memref.load %arg1[%14] : memref<16xi32, #tpu.memory_space<smem>>
    %16 = arith.index_cast %15 : i32 to index
    %c0_4 = arith.constant 0 : index
    %17 = vector.load %arg2[%16, %c0_4] : memref<256x128xf32, #tpu.memory_space<vmem>>, vector<1x128xf32>
    %c2 = arith.constant 2 : index
    %c0_5 = arith.constant 0 : index
    %18 = vector.load %arg3[%c2, %c0_5] : memref<16x128xf32, #tpu.memory_space<vmem>>, vector<1x128xf32>
    tpu.vector_store %arg3[%c2, %c0_5], %17 {strides = array<i32>} : memref<16x128xf32, #tpu.memory_space<vmem>>, vector<1x128xf32>,
    %c3_i32 = arith.constant 3 : i32
    %19 = arith.addi %0, %c3_i32 : i32
    %20 = arith.index_cast %19 : i32 to index
    %21 = memref.load %arg1[%20] : memref<16xi32, #tpu.memory_space<smem>>
    %22 = arith.index_cast %21 : i32 to index
    %c0_6 = arith.constant 0 : index
    %23 = vector.load %arg2[%22, %c0_6] : memref<256x128xf32, #tpu.memory_space<vmem>>, vector<1x128xf32>
    %c3 = arith.constant 3 : index
    %c0_7 = arith.constant 0 : index
    %24 = vector.load %arg3[%c3, %c0_7] : memref<16x128xf32, #tpu.memory_space<vmem>>, vector<1x128xf32>
    tpu.vector_store %arg3[%c3, %c0_7], %23 {strides = array<i32>} : memref<16x128xf32, #tpu.memory_space<vmem>>, vector<1x128xf32>,
    %c4_i32 = arith.constant 4 : i32
    %25 = arith.addi %0, %c4_i32 : i32
    %26 = arith.index_cast %25 : i32 to index
    %27 = memref.load %arg1[%26] : memref<16xi32, #tpu.memory_space<smem>>
    %28 = arith.index_cast %27 : i32 to index
    %c0_8 = arith.constant 0 : index
    %29 = vector.load %arg2[%28, %c0_8] : memref<256x128xf32, #tpu.memory_space<vmem>>, vector<1x128xf32>
    %c4 = arith.constant 4 : index
    %c0_9 = arith.constant 0 : index
    %30 = vector.load %arg3[%c4, %c0_9] : memref<16x128xf32, #tpu.memory_space<vmem>>, vector<1x128xf32>
    tpu.vector_store %arg3[%c4, %c0_9], %29 {strides = array<i32>} : memref<16x128xf32, #tpu.memory_space<vmem>>, vector<1x128xf32>,
    %c5_i32 = arith.constant 5 : i32
    %31 = arith.addi %0, %c5_i32 : i32
    %32 = arith.index_cast %31 : i32 to index
    %33 = memref.load %arg1[%32] : memref<16xi32, #tpu.memory_space<smem>>
    %34 = arith.index_cast %33 : i32 to index
    %c0_10 = arith.constant 0 : index
    %35 = vector.load %arg2[%34, %c0_10] : memref<256x128xf32, #tpu.memory_space<vmem>>, vector<1x128xf32>
    %c5 = arith.constant 5 : index
    %c0_11 = arith.constant 0 : index
    %36 = vector.load %arg3[%c5, %c0_11] : memref<16x128xf32, #tpu.memory_space<vmem>>, vector<1x128xf32>
    tpu.vector_store %arg3[%c5, %c0_11], %35 {strides = array<i32>} : memref<16x128xf32, #tpu.memory_space<vmem>>, vector<1x128xf32>,
    %c6_i32 = arith.constant 6 : i32
    %37 = arith.addi %0, %c6_i32 : i32
    %38 = arith.index_cast %37 : i32 to index
    %39 = memref.load %arg1[%38] : memref<16xi32, #tpu.memory_space<smem>>
    %40 = arith.index_cast %39 : i32 to index
    %c0_12 = arith.constant 0 : index
    %41 = vector.load %arg2[%40, %c0_12] : memref<256x128xf32, #tpu.memory_space<vmem>>, vector<1x128xf32>
    %c6 = arith.constant 6 : index
    %c0_13 = arith.constant 0 : index
    %42 = vector.load %arg3[%c6, %c0_13] : memref<16x128xf32, #tpu.memory_space<vmem>>, vector<1x128xf32>
    tpu.vector_store %arg3[%c6, %c0_13], %41 {strides = array<i32>} : memref<16x128xf32, #tpu.memory_space<vmem>>, vector<1x128xf32>,
    %c7_i32 = arith.constant 7 : i32
    %43 = arith.addi %0, %c7_i32 : i32
    %44 = arith.index_cast %43 : i32 to index
    %45 = memref.load %arg1[%44] : memref<16xi32, #tpu.memory_space<smem>>
    %46 = arith.index_cast %45 : i32 to index
    %c0_14 = arith.constant 0 : index
    %47 = vector.load %arg2[%46, %c0_14] : memref<256x128xf32, #tpu.memory_space<vmem>>, vector<1x128xf32>
    %c7 = arith.constant 7 : index
    %c0_15 = arith.constant 0 : index
    %48 = vector.load %arg3[%c7, %c0_15] : memref<16x128xf32, #tpu.memory_space<vmem>>, vector<1x128xf32>
    tpu.vector_store %arg3[%c7, %c0_15], %47 {strides = array<i32>} : memref<16x128xf32, #tpu.memory_space<vmem>>, vector<1x128xf32>,
    %c8_i32 = arith.constant 8 : i32
    %49 = arith.addi %0, %c8_i32 : i32
    %50 = arith.index_cast %49 : i32 to index
    %51 = memref.load %arg1[%50] : memref<16xi32, #tpu.memory_space<smem>>
    %52 = arith.index_cast %51 : i32 to index
    %c0_16 = arith.constant 0 : index
    %53 = vector.load %arg2[%52, %c0_16] : memref<256x128xf32, #tpu.memory_space<vmem>>, vector<1x128xf32>
    %c8 = arith.constant 8 : index
    %c0_17 = arith.constant 0 : index
    %54 = vector.load %arg3[%c8, %c0_17] : memref<16x128xf32, #tpu.memory_space<vmem>>, vector<1x128xf32>
    tpu.vector_store %arg3[%c8, %c0_17], %53 {strides = array<i32>} : memref<16x128xf32, #tpu.memory_space<vmem>>, vector<1x128xf32>,
    %c9_i32 = arith.constant 9 : i32
    %55 = arith.addi %0, %c9_i32 : i32
    %56 = arith.index_cast %55 : i32 to index
    %57 = memref.load %arg1[%56] : memref<16xi32, #tpu.memory_space<smem>>
    %58 = arith.index_cast %57 : i32 to index
    %c0_18 = arith.constant 0 : index
    %59 = vector.load %arg2[%58, %c0_18] : memref<256x128xf32, #tpu.memory_space<vmem>>, vector<1x128xf32>
    %c9 = arith.constant 9 : index
    %c0_19 = arith.constant 0 : index
    %60 = vector.load %arg3[%c9, %c0_19] : memref<16x128xf32, #tpu.memory_space<vmem>>, vector<1x128xf32>
    tpu.vector_store %arg3[%c9, %c0_19], %59 {strides = array<i32>} : memref<16x128xf32, #tpu.memory_space<vmem>>, vector<1x128xf32>,
    %c10_i32 = arith.constant 10 : i32
    %61 = arith.addi %0, %c10_i32 : i32
    %62 = arith.index_cast %61 : i32 to index
    %63 = memref.load %arg1[%62] : memref<16xi32, #tpu.memory_space<smem>>
    %64 = arith.index_cast %63 : i32 to index
    %c0_20 = arith.constant 0 : index
    %65 = vector.load %arg2[%64, %c0_20] : memref<256x128xf32, #tpu.memory_space<vmem>>, vector<1x128xf32>
    %c10 = arith.constant 10 : index
    %c0_21 = arith.constant 0 : index
    %66 = vector.load %arg3[%c10, %c0_21] : memref<16x128xf32, #tpu.memory_space<vmem>>, vector<1x128xf32>
    tpu.vector_store %arg3[%c10, %c0_21], %65 {strides = array<i32>} : memref<16x128xf32, #tpu.memory_space<vmem>>, vector<1x128xf32>,
    %c11_i32 = arith.constant 11 : i32
    %67 = arith.addi %0, %c11_i32 : i32
    %68 = arith.index_cast %67 : i32 to index
    %69 = memref.load %arg1[%68] : memref<16xi32, #tpu.memory_space<smem>>
    %70 = arith.index_cast %69 : i32 to index
    %c0_22 = arith.constant 0 : index
    %71 = vector.load %arg2[%70, %c0_22] : memref<256x128xf32, #tpu.memory_space<vmem>>, vector<1x128xf32>
    %c11 = arith.constant 11 : index
    %c0_23 = arith.constant 0 : index
    %72 = vector.load %arg3[%c11, %c0_23] : memref<16x128xf32, #tpu.memory_space<vmem>>, vector<1x128xf32>
    tpu.vector_store %arg3[%c11, %c0_23], %71 {strides = array<i32>} : memref<16x128xf32, #tpu.memory_space<vmem>>, vector<1x128xf32>,
    %c12_i32 = arith.constant 12 : i32
    %73 = arith.addi %0, %c12_i32 : i32
    %74 = arith.index_cast %73 : i32 to index
    %75 = memref.load %arg1[%74] : memref<16xi32, #tpu.memory_space<smem>>
    %76 = arith.index_cast %75 : i32 to index
    %c0_24 = arith.constant 0 : index
    %77 = vector.load %arg2[%76, %c0_24] : memref<256x128xf32, #tpu.memory_space<vmem>>, vector<1x128xf32>
    %c12 = arith.constant 12 : index
    %c0_25 = arith.constant 0 : index
    %78 = vector.load %arg3[%c12, %c0_25] : memref<16x128xf32, #tpu.memory_space<vmem>>, vector<1x128xf32>
    tpu.vector_store %arg3[%c12, %c0_25], %77 {strides = array<i32>} : memref<16x128xf32, #tpu.memory_space<vmem>>, vector<1x128xf32>,
    %c13_i32 = arith.constant 13 : i32
    %79 = arith.addi %0, %c13_i32 : i32
    %80 = arith.index_cast %79 : i32 to index
    %81 = memref.load %arg1[%80] : memref<16xi32, #tpu.memory_space<smem>>
    %82 = arith.index_cast %81 : i32 to index
    %c0_26 = arith.constant 0 : index
    %83 = vector.load %arg2[%82, %c0_26] : memref<256x128xf32, #tpu.memory_space<vmem>>, vector<1x128xf32>
    %c13 = arith.constant 13 : index
    %c0_27 = arith.constant 0 : index
    %84 = vector.load %arg3[%c13, %c0_27] : memref<16x128xf32, #tpu.memory_space<vmem>>, vector<1x128xf32>
    tpu.vector_store %arg3[%c13, %c0_27], %83 {strides = array<i32>} : memref<16x128xf32, #tpu.memory_space<vmem>>, vector<1x128xf32>,
    %c14_i32 = arith.constant 14 : i32
    %85 = arith.addi %0, %c14_i32 : i32
    %86 = arith.index_cast %85 : i32 to index
    %87 = memref.load %arg1[%86] : memref<16xi32, #tpu.memory_space<smem>>
    %88 = arith.index_cast %87 : i32 to index
    %c0_28 = arith.constant 0 : index
    %89 = vector.load %arg2[%88, %c0_28] : memref<256x128xf32, #tpu.memory_space<vmem>>, vector<1x128xf32>
    %c14 = arith.constant 14 : index
    %c0_29 = arith.constant 0 : index
    %90 = vector.load %arg3[%c14, %c0_29] : memref<16x128xf32, #tpu.memory_space<vmem>>, vector<1x128xf32>
    tpu.vector_store %arg3[%c14, %c0_29], %89 {strides = array<i32>} : memref<16x128xf32, #tpu.memory_space<vmem>>, vector<1x128xf32>,
    %c15_i32 = arith.constant 15 : i32
    %91 = arith.addi %0, %c15_i32 : i32
    %92 = arith.index_cast %91 : i32 to index
    %93 = memref.load %arg1[%92] : memref<16xi32, #tpu.memory_space<smem>>
    %94 = arith.index_cast %93 : i32 to index
    %c0_30 = arith.constant 0 : index
    %95 = vector.load %arg2[%94, %c0_30] : memref<256x128xf32, #tpu.memory_space<vmem>>, vector<1x128xf32>
    %c15 = arith.constant 15 : index
    %c0_31 = arith.constant 0 : index
    %96 = vector.load %arg3[%c15, %c0_31] : memref<16x128xf32, #tpu.memory_space<vmem>>, vector<1x128xf32>
    tpu.vector_store %arg3[%c15, %c0_31], %95 {strides = array<i32>} : memref<16x128xf32, #tpu.memory_space<vmem>>, vector<1x128xf32>,
    return
  }
  func.func @transform_0(%arg0: i32, %arg1: memref<16xi32, #tpu.memory_space<smem>>) -> (i32, i32) {
    %c0_i32 = arith.constant 0 : i32
    %c0_i32_0 = arith.constant 0 : i32
    %c0_i32_1 = arith.constant 0 : i32
    return %c0_i32, %c0_i32_0 : i32, i32
  }
  func.func @transform_1(%arg0: i32, %arg1: memref<16xi32, #tpu.memory_space<smem>>) -> (i32, i32) {
    %c0_i32 = arith.constant 0 : i32
    %c0_i32_0 = arith.constant 0 : i32
    return %arg0, %c0_i32 : i32, i32
  }
}

</mosaic_0001>

<bundles_post_ra>
// kernel: base_nn_forward.3
= control target key start
LH: loop header
LB: loop body
LE: loop exit
PB: predicated region body
PF: predicated region fallthrough
CT: control target
= control target key end

     0   :  { %8 = vsyncpa [#allocation3], 0  ;;  %s814_s0 = inlined_call_operand.vmem [shape: bf16[2,128], index: 0, kind: input, shape index: {}]   ;;  %s815_s1 = inlined_call_operand.hbm [shape: bf16[128,256], index: 1, kind: input, shape index: {}]   ;;  %s816_s2 = inlined_call_operand.vmem [shape: f32[1,256], index: 2, kind: input, shape index: {}]   ;;  %s817_s3 = inlined_call_operand.hbm [shape: f32[2,256], index: 3, kind: output, shape index: {}]  }
   0x1   :  { %10 = vsyncpa [#allocation3 + $0x1], 0 }
   0x2   :  { %11 = vsyncpa [#allocation4], 0 }
   0x3   :  { %13 = vsyncpa [#allocation4 + $0x1], 0  ;;  %s643_s12 = smov 0   ;;  %s645_s13 = smov 0  }
   0x4   :  { %s647_s14 = smov 0   ;;  %s649_s15 = smov 0  }
   0x5 LB: > { %s664_s16 = sadd.s32 4294967295, %s614_s15   ;;  %s409_s17 = sadd.s32 4294967294, %s614_s15   ;;  %s614_s15 = sphi %s649_s15, %s831_s15   ;;  %s610_s14 = sphi %s647_s14, %s830_s14   ;;  %s606_s13 = sphi %s645_s13, %s829_s13   ;;  %s602_s12 = sphi %s643_s12, %s828_s12  }
   0x6   : > { %s668_s18 = sadd.s32 1, %s614_s15   ;;  %s47_s19 = sadd.s32 1, %s610_s14 }
   0x7   : > { %s44_s20 = ssub.s32 %s614_s15, %s668_s18  ;;  %p54_p0 = scmp.ne.s32.totalorder %s610_s14, %s606_s13 }
   0x8   : > { %p45_p1 = scmp.eq.s32.totalorder %s44_s20, 0  ;;  %p55_p2 = scmp.eq.s32.totalorder %s614_s15, 0 }
   0x9   : > { %p60_p3 = scmp.ne.s32.totalorder %s606_s13, %s602_s12  ;;  %p61_p4 = scmp.eq.s32.totalorder %s664_s16, 0 }
   0xa   : > { %s680_s21 = scalar_select %p45_p1, %s610_s14, %s47_s19  }
   0xb   : > { %p682_p5 = por %p55_p2, %p54_p0  ;;  %p686_p6 = por %p61_p4, %p60_p3 }
   0xc   : > { %p110_p7 = scmp.eq.s32.totalorder %s664_s16, 1  ;;  %p116_p8 = scmp.eq.s32.totalorder %s409_s17, 1 }
   0xd   : > { %p471_p10 = scmp.lt.s32.totalorder %s614_s15, 2  ;;  %s139_s26 = sand.u32 1, %s610_s14  }
   0xe   : > { %p693_p11 = por %p110_p7, %p54_p0  ;;  %p697_p12 = por %p116_p8, %p60_p3 }
   0xf   : > { %s413_s27 = sshll.u32 %s614_s15, 6  ;;  %s412_s28 = sshll.u32 %s139_s26, 6 }
  0x10   : > { %s821_s24 = scalar_select %p693_p11, 1, 0 }
  0x11   : > { %s822_s25 = scalar_select %p697_p12, 1, 0 }
  0x12   : > { %s706_s4 = scalar_lea.hbm %s815_s1, %s413_s27  ;;  %s143_s5 = scalar_lea.vmem [#allocation2], %s412_s28 }
  0x13   : > { %s149_s6 = sshll.u32 %s143_s5, 4  ;;  %p710_p13 = pnand %p471_p10, %p682_p5  ;;  %s714_s6 = int_to_ptr.vmem [resolvable:$true] %s149_s6 }
  0x14   : > { %s717_s8 = scalar_lea.sflag [#allocation3], %s139_s26  ;;  %s518_s9 = scalar_lea.hbm %s706_s4, 1024 }
  0x15   : > { %p519_p1 = scmp.ne.s32.totalorder %s706_s4, %s518_s9  ;;  %p520_p2 = pneg %p710_p13 }
  0x16   : > { %s523_s17 = scalar_lea.hbm %s815_s1, 2048  ;;  %p524_p5 = scmp.lt.u32.totalorder %s706_s4, %s815_s1 }
  0x17   : > { %p521_p3 = pnand %p520_p2, %p519_p1  ;;  %p525_p7 = scmp.lt.u32.totalorder %s523_s17, %s518_s9 }
  0x18   : > { %p527_p10 = scmp.lt.u32.totalorder %s518_s9, %s706_s4 }
  0x19   : > { %p522_p4 = pneg %p521_p3  ;;  %p526_p8 = por %p525_p7, %p524_p5 }
  0x1b   : > { %p528_p9 = por %p527_p10, %p526_p8 }
  0x1d   : > { %p529_p0 = pnand %p528_p9, %p522_p4 }
  0x1f   : > { %532 = shalt.err (!%p529_p0)
}
  0x20   : > { %s533_s22 = scalar_lea.vmem %s714_s6, 1024  ;;  %s616_s26 = smov [#allocation2]  }
  0x21   : > { %p534_p1 = scmp.ne.s32.totalorder %s714_s6, %s533_s22  ;;  %s538_s27 = sshll.u32 %s616_s26, 4  ;;  %s539_s27 = int_to_ptr.vmem [resolvable:$false] %s538_s27 }
  0x22   : > { %s540_s28 = scalar_lea.vmem %s539_s27, 2048  ;;  %p541_p11 = scmp.lt.s32.totalorder %s714_s6, %s539_s27 }
  0x23   : > { %p536_p3 = pnand %p534_p1, %p520_p2  ;;  %p542_p5 = scmp.lt.s32.totalorder %s540_s28, %s533_s22 }
  0x25   : > { %p537_p12 = pneg %p536_p3  ;;  %p543_p7 = por %p542_p5, %p541_p11 }
  0x27   : > { %p544_p8 = pnand %p543_p7, %p537_p12 }
  0x29   : > { %547 = shalt.err (!%p544_p8)
}
  0x2a   : > { %s617_s29 = smov 128   ;;  %s618_s30 = smov 64  }
  0x2b   : > { %s619_s5 = smov 4   ;;  %p163_p9 = scmp.lt.s32.totalorder %s614_s15, 3 }
  0x2c   : > { %466 = dma.hbm_to_vmem [thread:$0]  (!%p710_p13), %s706_s4, 1024, %s714_s6, %s717_s8, %s617_s29, %s618_s30, %s619_s5  }
  0x2d   : > { %p824_p0 = scmp.ge.s32.totalorder %s614_s15, 1 }
  0x2f   : > { %p164_p2 = pnand %p824_p0, %p163_p9 }
  0x30   : > { %s749_s9 = sand.u32 (!%p164_p2), 1, %s606_s13  }
  0x31   : > { %167 = sbr.rel (%p164_p2) target bundleno = 318 (0x13e), region = 32  ;;  %s415_s10 = sshll.u32 (!%p164_p2), %s749_s9, 6 }
  0x32   : > { %s170_s11 = scalar_lea.sflag (!%p164_p2), [#allocation3], %s749_s9  ;;  %s173_s17 = scalar_lea.vmem (!%p164_p2), [#allocation2], %s415_s10 }
  0x38   : > { %593 = dma.done.wait (%p686_p6), %s170_s11, 1024  }
  0x39   : > { %595 = vsyncadd (%p686_p6), %s170_s11, 4294966272  ;;  %v620_v0 = vmov 0.0   ;;  %vm621_vm0 = vmmov 0   ;;  %v510_v1 = vld [vmem:[%s173_s17] sm:$0xff]   ;;  %v511_v2 = vld [vmem:[%s173_s17 + $0x8] sm:$0xff]   ;;  %p199_p6 = scmp.lt.s32.totalorder %s664_s16, 1 }
  0x3a   : > { %439 = vmatprep.subr.bf16.mxu0 %v620_v0  ;;  %455 = vmatprep.mubr.msk.bf16.mxu0 %vm621_vm0, %v620_v0  ;;  %v512_v3 = vld [vmem:[%s173_s17 + $0x10] sm:$0xff]   ;;  %v513_v4 = vld [vmem:[%s173_s17 + $0x18] sm:$0xff]   ;;  %v514_v5 = vld [vmem:[%s173_s17 + $0x20] sm:$0xff]   ;;  %s416_s7 = sshll.u32 %s749_s9, 1  ;;  %s427_s22 = sshll.u32 %s664_s16, 5 }
  0x3b   : > { %440 = vmatpush3.bf16.msra.mxu0 %v510_v1  ;;  %v515_v6 = vld [vmem:[%s173_s17 + $0x28] sm:$0xff]   ;;  %v516_v7 = vld [vmem:[%s173_s17 + $0x30] sm:$0xff]   ;;  %v517_v8 = vld [vmem:[%s173_s17 + $0x38] sm:$0xff]   ;;  %s200_s6 = scalar_select %p199_p6, %s664_s16, 1 }
  0x3c   : > { %441 = vmatprep.subr.bf16.mxu0 %v620_v0  ;;  %v203_v9 = vld [vmem:[%s814_s0] sm:$0x1]  ;;  %s198_s26 = scalar_lea.vmem [#allocation5], %s416_s7  ;;  %s770_s30 = scalar_lea.hbm %s817_s3, %s427_s22 }
  0x3d   : > { %s201_s20 = scalar_lea.vmem %s816_s2, %s200_s6  ;;  %s330_s27 = sshll.u32 %s198_s26, 4  ;;  %s772_s27 = int_to_ptr.vmem [resolvable:$true] %s330_s27 }
  0x3e   : > { %v417_v10 = vld [vmem:[%s201_s20] ss:$0 sm:$0xff]  ;;  %s317_s5 = scalar_lea.sflag [#allocation4], %s749_s9  ;;  %s548_s16 = scalar_lea.vmem %s772_s27, 32 }
  0x3f   : > { %442 = vmatpush3.bf16.msra.mxu0 %v511_v2  ;;  %p549_p11 = scmp.ne.s32.totalorder %s772_s27, %s548_s16  ;;  %p825_p12 = scmp.ne.s32.totalorder %s821_s24, 0 }
  0x40   : > { %443 = vmatprep.subr.bf16.mxu0 %v620_v0  ;;  %s622_s10 = smov [#allocation5]  }
  0x41   : > { %p550_p13 = pnand %p549_p11, %p825_p12  ;;  %s552_s11 = sshll.u32 %s622_s10, 4  ;;  %s553_s11 = int_to_ptr.vmem [resolvable:$false] %s552_s11 }
  0x42   : > { %s554_s17 = scalar_lea.vmem %s553_s11, 64  ;;  %p555_p10 = scmp.lt.s32.totalorder %s772_s27, %s553_s11 }
  0x43   : > { %444 = vmatpush3.bf16.msra.mxu0 %v512_v3  ;;  %p551_p4 = pneg %p550_p13  ;;  %p556_p1 = scmp.lt.s32.totalorder %s554_s17, %s548_s16 }
  0x44   : > { %445 = vmatprep.subr.bf16.mxu0 %v620_v0 }
  0x45   : > { %p557_p3 = por %p556_p1, %p555_p10 }
  0x47   : > { %446 = vmatpush3.bf16.msra.mxu0 %v513_v4  ;;  %p558_p5 = pnand %p557_p3, %p551_p4 }
  0x48   : > { %447 = vmatprep.subr.bf16.mxu0 %v620_v0 }
  0x4b   : > { %448 = vmatpush3.bf16.msra.mxu0 %v514_v5 }
  0x4c   : > { %449 = vmatprep.subr.bf16.mxu0 %v620_v0 }
  0x4f   : > { %450 = vmatpush3.bf16.msra.mxu0 %v515_v6 }
  0x50   : > { %451 = vmatprep.subr.bf16.mxu0 %v620_v0 }
  0x53   : > { %452 = vmatpush3.bf16.msra.mxu0 %v516_v7 }
  0x54   : > { %453 = vmatprep.subr.bf16.mxu0 %v620_v0 }
  0x57   : > { %454 = vmatpush3.bf16.msra.mxu0 %v517_v8 }
  0x5a   : > { %456 = vmatmul.mubr.bf16.vlgmr.msra.gmra.mrb[0].mxu0 %v203_v9 }
 0x12d   : > { %v309_v11 = vpop.f32.mrb[0].mxu0 }
 0x12e   : > { %v310_v12 = vadd.f32 %v417_v10, %v309_v11  ;;  %v457_v13 = vpop.f32.mrb[1].mxu0 }
 0x12f   : > { %v312_v14 = vpop.f32.mrb[2].mxu0 }
 0x130   : > { %315 = vst [vmem:[%s198_s26] sm:$0x3] %v310_v12  ;;  %v458_v15 = vpop.f32.mrb[3].mxu0 }
 0x131   : > { %561 = shalt.err (!%p558_p5)
}
 0x132   : > { %s562_s9 = scalar_lea.hbm %s770_s30, 32  ;;  %s566_s6 = scalar_lea.hbm %s817_s3, 64 }
 0x133   : > { %p563_p7 = scmp.ne.s32.totalorder %s770_s30, %s562_s9  ;;  %p567_p0 = scmp.lt.u32.totalorder %s770_s30, %s817_s3 }
 0x134   : > { %p568_p2 = scmp.lt.u32.totalorder %s566_s6, %s562_s9  ;;  %p570_p11 = scmp.lt.u32.totalorder %s562_s9, %s770_s30 }
 0x135   : > { %p564_p8 = pnand %p563_p7, %p825_p12 }
 0x136   : > { %p569_p6 = por %p568_p2, %p567_p0 }
 0x137   : > { %p565_p9 = pneg %p564_p8 }
 0x138   : > { %p571_p13 = por %p570_p11, %p569_p6 }
 0x13a   : > { %p572_p4 = pnand %p571_p13, %p565_p9 }
 0x13c   : > { %575 = shalt.err (!%p572_p4)
}
 0x13d   : > { %461 = dma.vmem_to_hbm [thread:$0]  (%p825_p12), %s772_s27, 32, %s770_s30, %s317_s5  }
 0x13e PF: > { %s342_s19 = sand.u32 1, %s602_s12   ;;  %p826_p10 = scmp.ne.s32.totalorder %s822_s25, 0 }
 0x13f   : > { %p827_p1 = scmp.ge.s32.totalorder %s614_s15, 2  ;;  %s343_s20 = scalar_lea.sflag [#allocation4], %s342_s19 }
 0x141   : > { %p468_p3 = pnand %p827_p1, %p826_p10 }
 0x143   : > { %597 = dma.done.wait (!%p468_p3), %s343_s20, 32  }
 0x144   : > { %599 = vsyncadd (!%p468_p3), %s343_s20, 4294967264  ;;  %p16_p5 = scmp.ge.s32.totalorder %s668_s18, 4   ;;  %s828_s12 = smov %s606_s13 }
 0x145   : > { %s829_s13 = smov %s610_s14  ;;  %s830_s14 = smov %s680_s21 }
 0x146   : > { %s831_s15 = smov %s668_s18  ;;  %18 = sbr.rel (!%p16_p5) target bundleno = 5 (0x5), region = 80 }
 0x14d   :  { %348 = vsyncpa [#allocation3], 1 }
 0x14e   :  { %350 = vsyncpa [#allocation3 + $0x1], 1 }
 0x14f   :  { %351 = vsyncpa [#allocation4], 1 }
 0x150   :  { %353 = vsyncpa [#allocation4 + $0x1], 1 }

// kernel: base_nn_forward.2
= control target key start
LH: loop header
LB: loop body
LE: loop exit
PB: predicated region body
PF: predicated region fallthrough
CT: control target
= control target key end

     0   :  { %s290_s0 = inlined_call_operand.vmem [shape: s32[16], index: 0, kind: input, shape index: {}]   ;;  %s291_s1 = inlined_call_operand.hbm [shape: f32[256,128], index: 1, kind: input, shape index: {}]   ;;  %s292_s2 = inlined_call_operand.hbm [shape: f32[16,128], index: 2, kind: output, shape index: {}]  }
   0x1   :  { %s7_s11 = sshll.u32 %s290_s0, 4  ;;  %s8_s11 = int_to_ptr.vmem [resolvable:$true] %s7_s11 }
   0x2   :  { %s163_s12 = scalar_lea.vmem %s8_s11, 16  ;;  %p168_p1 = scmp.lt.s32.totalorder %s8_s11, %s8_s11 }
   0x3   :  { %p164_p0 = scmp.ne.s32.totalorder %s8_s11, %s163_s12  ;;  %p169_p2 = scmp.lt.s32.totalorder %s163_s12, %s163_s12 }
   0x5   :  { %p170_p3 = por %p169_p2, %p168_p1 }
   0x7   :  { %p171_p4 = pnand %p170_p3, %p164_p0 }
   0x9   :  { %174 = shalt.err (!%p171_p4)  }
   0xa   :  { %s225_s13 = smov [#allocation3]  }
   0xb   :  { %10 = dma.vmem_to_smem %s8_s11, 16, %s225_s13, [#allocation2] }
   0xc   :  { %219 = dma.done.wait [#allocation2], 16 }
   0xd   :  { %220 = vsyncadd [#allocation2], 4294967280 }
   0xe   :  { %12 = sfence }
   0xf   :  { %13 = vsyncpa [#allocation5], 0 }
  0x10   :  { %14 = vsyncpa [#allocation6], 0  ;;  %s226_s14 = smov [#allocation4]   ;;  %s175_s17 = scalar_lea.hbm %s291_s1, 4096 }
  0x11   :  { %s20_s15 = sshll.u32 %s226_s14, 4  ;;  %p176_p5 = scmp.ne.s32.totalorder %s291_s1, %s175_s17  ;;  %s21_s15 = int_to_ptr.vmem [resolvable:$true] %s20_s15 }
  0x12   :  { %p179_p6 = scmp.lt.u32.totalorder %s175_s17, %s291_s1 }
  0x14   :  { %p181_p7 = pnand %p179_p6, %p176_p5 }
  0x16   :  { %184 = shalt.err (!%p181_p7)
}
  0x17   :  { %s185_s22 = scalar_lea.vmem %s21_s15, 4096  ;;  %p190_p9 = scmp.lt.s32.totalorder %s21_s15, %s21_s15 }
  0x18   :  { %p186_p8 = scmp.ne.s32.totalorder %s21_s15, %s185_s22  ;;  %p191_p10 = scmp.lt.s32.totalorder %s185_s22, %s185_s22 }
  0x1a   :  { %p192_p11 = por %p191_p10, %p190_p9 }
  0x1c   :  { %p193_p12 = pnand %p192_p11, %p186_p8 }
  0x1e   :  { %196 = shalt.err (!%p193_p12)
}
  0x1f   :  { %s227_s23 = smov 128   ;;  %s228_s24 = smov 8  }
  0x20   :  { %26 = dma.hbm_to_vmem [thread:$0]  %s291_s1, 4096, %s21_s15, [#allocation5], %s227_s23, %s227_s23, %s228_s24  }
  0x21   :  { %221 = dma.done.wait [#allocation5], 4096  }
  0x22   :  { %222 = vsyncadd [#allocation5], 4294963200  ;;  %s31_s27 = sld [smem:[#allocation3]]  ;;  %s143_s28 = sld [smem:[#allocation3 + $0x1]] }
  0x23   :  { %s144_s29 = sld [smem:[#allocation3 + $0x2]]  ;;  %s145_s30 = sld [smem:[#allocation3 + $0x3]] }
  0x24   :  { %s146_s3 = sld [smem:[#allocation3 + $0x4]]  ;;  %s147_s4 = sld [smem:[#allocation3 + $0x5]] }
  0x25   :  { %s148_s5 = sld [smem:[#allocation3 + $0x6]]  ;;  %s149_s6 = sld [smem:[#allocation3 + $0x7]] }
  0x26   :  { %s263_s7 = sld [smem:[#allocation3 + $0x8]]  ;;  %s265_s8 = sld [smem:[#allocation3 + $0x9]] }
  0x27   :  { %s267_s9 = sld [smem:[#allocation3 + $0xa]]  ;;  %s269_s10 = sld [smem:[#allocation3 + $0xb]] }
  0x28   :  { %s32_s11 = scalar_lea.vmem [#allocation4], %s31_s27  ;;  %s37_s1 = scalar_lea.vmem [#allocation4], %s143_s28 }
  0x29   :  { %v33_v0 = vld [vmem:[%s32_s11] sm:$0x1]  ;;  %s42_s12 = scalar_lea.vmem [#allocation4], %s144_s29  ;;  %s47_s13 = scalar_lea.vmem [#allocation4], %s145_s30 }
  0x2a   :  { %v38_v1 = vld [vmem:[%s37_s1] sm:$0x1]  ;;  %34 = vst [vmem:[#allocation7] sm:$0x1] %v33_v0  ;;  %s52_s14 = scalar_lea.vmem [#allocation4], %s146_s3  ;;  %s57_s15 = scalar_lea.vmem [#allocation4], %s147_s4 }
  0x2b   :  { %39 = vst [vmem:[#allocation7 + $0x1] sm:$0x1] %v38_v1  ;;  %v43_v2 = vld [vmem:[%s42_s12] sm:$0x1]  ;;  %s62_s16 = scalar_lea.vmem [#allocation4], %s148_s5  ;;  %s67_s0 = scalar_lea.vmem [#allocation4], %s149_s6 }
  0x2c   :  { %v48_v3 = vld [vmem:[%s47_s13] sm:$0x1]  ;;  %44 = vst [vmem:[#allocation7 + $0x2] sm:$0x1] %v43_v2  ;;  %s72_s17 = scalar_lea.vmem [#allocation4], %s263_s7  ;;  %s77_s18 = scalar_lea.vmem [#allocation4], %s265_s8 }
  0x2d   :  { %49 = vst [vmem:[#allocation7 + $0x3] sm:$0x1] %v48_v3  ;;  %v53_v4 = vld [vmem:[%s52_s14] sm:$0x1]  ;;  %s82_s19 = scalar_lea.vmem [#allocation4], %s267_s9  ;;  %s87_s20 = scalar_lea.vmem [#allocation4], %s269_s10 }
  0x2e   :  { %v58_v5 = vld [vmem:[%s57_s15] sm:$0x1]  ;;  %54 = vst [vmem:[#allocation7 + $0x4] sm:$0x1] %v53_v4  ;;  %s154_s21 = sld [smem:[#allocation3 + $0xc]]  ;;  %s155_s22 = sld [smem:[#allocation3 + $0xd]] }
  0x2f   :  { %59 = vst [vmem:[#allocation7 + $0x5] sm:$0x1] %v58_v5  ;;  %v63_v6 = vld [vmem:[%s62_s16] sm:$0x1]  ;;  %s156_s25 = sld [smem:[#allocation3 + $0xe]]  ;;  %s157_s26 = sld [smem:[#allocation3 + $0xf]] }
  0x30   :  { %v68_v7 = vld [vmem:[%s67_s0] sm:$0x1]  ;;  %64 = vst [vmem:[#allocation7 + $0x6] sm:$0x1] %v63_v6  ;;  %s229_s27 = smov [#allocation7]  }
  0x31   :  { %69 = vst [vmem:[#allocation7 + $0x7] sm:$0x1] %v68_v7  ;;  %v73_v8 = vld [vmem:[%s72_s17] sm:$0x1]  ;;  %s115_s28 = sshll.u32 %s229_s27, 4  ;;  %s116_s28 = int_to_ptr.vmem [resolvable:$true] %s115_s28 }
  0x32   :  { %v78_v9 = vld [vmem:[%s77_s18] sm:$0x1]  ;;  %74 = vst [vmem:[#allocation7 + $0x8] sm:$0x1] %v73_v8  ;;  %s197_s5 = scalar_lea.vmem %s116_s28, 256  ;;  %p202_p0 = scmp.lt.s32.totalorder %s116_s28, %s116_s28 }
  0x33   :  { %79 = vst [vmem:[#allocation7 + $0x9] sm:$0x1] %v78_v9  ;;  %v83_v10 = vld [vmem:[%s82_s19] sm:$0x1]  ;;  %p198_p13 = scmp.ne.s32.totalorder %s116_s28, %s197_s5  ;;  %p203_p1 = scmp.lt.s32.totalorder %s197_s5, %s197_s5 }
  0x34   :  { %v88_v11 = vld [vmem:[%s87_s20] sm:$0x1]  ;;  %84 = vst [vmem:[#allocation7 + $0xa] sm:$0x1] %v83_v10  ;;  %s92_s29 = scalar_lea.vmem [#allocation4], %s154_s21  ;;  %s97_s30 = scalar_lea.vmem [#allocation4], %s155_s22 }
  0x35   :  { %89 = vst [vmem:[#allocation7 + $0xb] sm:$0x1] %v88_v11  ;;  %v93_v12 = vld [vmem:[%s92_s29] sm:$0x1]  ;;  %s102_s3 = scalar_lea.vmem [#allocation4], %s156_s25  ;;  %s107_s4 = scalar_lea.vmem [#allocation4], %s157_s26 }
  0x36   :  { %94 = vst [vmem:[#allocation7 + $0xc] sm:$0x1] %v93_v12  ;;  %v98_v13 = vld [vmem:[%s97_s30] sm:$0x1]  ;;  %p204_p2 = por %p203_p1, %p202_p0 }
  0x37   :  { %v103_v14 = vld [vmem:[%s102_s3] sm:$0x1]  ;;  %99 = vst [vmem:[#allocation7 + $0xd] sm:$0x1] %v98_v13 }
  0x38   :  { %104 = vst [vmem:[#allocation7 + $0xe] sm:$0x1] %v103_v14  ;;  %v108_v15 = vld [vmem:[%s107_s4] sm:$0x1]  ;;  %p205_p3 = pnand %p204_p2, %p198_p13 }
  0x39   :  { %109 = vst [vmem:[#allocation7 + $0xf] sm:$0x1] %v108_v15 }
  0x3a   :  { %208 = shalt.err (!%p205_p3)
}
  0x3b   :  { %s209_s8 = scalar_lea.hbm %s292_s2, 256 }
  0x3c   :  { %p210_p4 = scmp.ne.s32.totalorder %s292_s2, %s209_s8  ;;  %p213_p5 = scmp.lt.u32.totalorder %s209_s8, %s292_s2 }
  0x3e   :  { %p215_p6 = pnand %p213_p5, %p210_p4 }
  0x40   :  { %218 = shalt.err (!%p215_p6)
}
  0x41   :  { %121 = dma.vmem_to_hbm [thread:$0]  %s116_s28, 256, %s292_s2, [#allocation6], %s227_s23, %s227_s23, %s228_s24  }
  0x42   :  { %223 = dma.done.wait [#allocation6], 256  }
  0x43   :  { %224 = vsyncadd [#allocation6], 4294967040 }
  0x44   :  { %125 = vsyncpa [#allocation5], 1 }
  0x45   :  { %126 = vsyncpa [#allocation6], 1 }

</bundles_post_ra>
